<compile_context>
chip_gen: v6e
topology: v6e:2x2x1
jax: 0.10.0
libtpu: 0.0.40
codegen_flags: <defaults>
</compile_context>

<pallas_src>
import functools

import jax
import jax.numpy as jnp
from jax.experimental import pallas as pl
from jax.experimental.pallas import tpu as pltpu

LANES = 128              # TPU lane width
_BIAS_LANE = LANES - 1   # activation lane forced to 1.0 so slab row 127 adds the bias


def _round_up(v, m):
    return (v + m - 1) // m * m


def _choose_batch_tile(B):
    """Batch tile: big (amortize per-step overhead), 8-aligned, >=2 grid steps for B>=512."""
    TB = min(1024, _round_up(B, 8))
    if B >= 512:  # enough work to shard the "parallel" axis across v7x's 2 TensorCores
        TB = min(TB, _round_up(-(-B // 2), 8))
    return TB


def _mlp_kernel(x_ref, b1_ref, slab_ref, out_ref, *, out_dim):
    """x_ref: [TB, in_dim] bf16, b1_ref: [1,128] f32, slab_ref: [4,128,128] bf16,
    out_ref: [TB,128] bf16 (lane 0 = sigmoid(vis), lanes 1..out_dim-1 = softmax(pred))."""
    in_dim = x_ref.shape[1]
    lane = jax.lax.broadcasted_iota(jnp.int32, (x_ref.shape[0], LANES), dimension=1)
    bias_lane = lane == _BIAS_LANE

    # Layer 1: natural-width bf16 input, [TB,in_dim] x [in_dim,128]; bias added as a vector.
    w1 = slab_ref[0][:in_dim, :]
    y = jnp.dot(x_ref[...], w1, preferred_element_type=jnp.float32)
    h = jnp.maximum(y + b1_ref[...], 0.0)

    # Layers 2-4: augmented-bias trick (lane 127 forced to 1.0 so slab row 127 adds bias).
    for layer in range(1, 4):
        a = jnp.where(bias_lane, 1.0, h).astype(jnp.bfloat16)
        y = jnp.dot(a, slab_ref[layer], preferred_element_type=jnp.float32)
        h = jnp.maximum(y, 0.0) if layer < 3 else y       # ReLU on layers 1-3 only

    # vis = sigmoid(y[:, 0]); numerically-stable tanh form (EUP, free under DMA).
    vis = 0.5 * jnp.tanh(0.5 * h) + 0.5

    # pred = softmax(y[:, 1:out_dim]) via a lane-masked reduction (no lane shift/realign).
    valid = (lane >= 1) & (lane < out_dim)
    masked = jnp.where(valid, h, -1e30)
    m = jnp.max(masked, axis=-1, keepdims=True)
    e = jnp.exp(masked - m)                               # masked lanes underflow to 0
    denom = jnp.sum(e, axis=-1, keepdims=True)
    pred = e * pl.reciprocal(denom, approx=True)          # EUP reciprocal (~1e-3 rel err)

    # Single lane-dense packed bf16 output (one unmasked vst DMA).
    out_ref[...] = jnp.where(lane == 0, vis, pred).astype(out_ref.dtype)


def prediction_mlp(x, slab, *, n_windows):
    """x: [B, in_dim] f32, slab: packed bf16 params [4,128,128]. Returns (pred, vis) f32."""
    B, in_dim = x.shape
    out_dim = n_windows + 1
    if n_windows < 1:
        raise ValueError("n_windows must be >= 1 (softmax needs at least one lane)")
    if in_dim != 2 * n_windows * n_windows or in_dim > _BIAS_LANE or out_dim > _BIAS_LANE:
        raise ValueError("PredictionMLP dims must match n_windows and fit in 127 lanes")

    TB = _choose_batch_tile(B)
    Bp = _round_up(B, TB)

    xb = x.astype(jnp.bfloat16)                 # bf16 input: halves x HBM bytes
    if Bp != B:
        xb = jnp.pad(xb, ((0, Bp - B), (0, 0)))
    # Layer-1 bias rides as a tiny resident f32 vector (layer 1 has no bias lane).
    b1 = slab[0, _BIAS_LANE:_BIAS_LANE + 1, :].astype(jnp.float32)

    flops = 2 * Bp * LANES * (in_dim + 3 * LANES)
    bytes_accessed = Bp * in_dim * 2 + slab.size * 2 + LANES * 4 + Bp * LANES * 2

    out = pl.pallas_call(
        functools.partial(_mlp_kernel, out_dim=out_dim),
        out_shape=jax.ShapeDtypeStruct((Bp, LANES), jnp.bfloat16),
        grid_spec=pltpu.PrefetchScalarGridSpec(
            num_scalar_prefetch=0,
            grid=(Bp // TB,),
            in_specs=[
                pl.BlockSpec((TB, in_dim), lambda i: (i, 0)),       # natural last dim
                pl.BlockSpec((1, LANES), lambda i: (0, 0)),         # layer-1 bias, resident
                pl.BlockSpec((4, LANES, LANES), lambda i: (0, 0, 0)),  # weight slab, resident
            ],
            out_specs=pl.BlockSpec((TB, LANES), lambda i: (i, 0)),
        ),
        compiler_params=pltpu.CompilerParams(dimension_semantics=("parallel",)),
        cost_estimate=pl.CostEstimate(
            flops=flops, transcendentals=2 * Bp * LANES, bytes_accessed=bytes_accessed),
    )(xb, b1, slab)

    # Values carry bf16 quantization (~4e-3 abs on probabilities); dtype restored to f32.
    vis = out[:B, 0].astype(jnp.float32)
    pred = out[:B, 1:out_dim].astype(jnp.float32)
    return pred, vis


def init_params(key, n_windows):
    """Deterministic synthetic parameters with the shapes PredictionMLP.__init__ implies."""
    in_dim = n_windows * n_windows * 2
    mid_dim = n_windows * n_windows
    out_dim = n_windows + 1

    def linear(k, fan_in, fan_out):
        k1, k2 = jax.random.split(k)
        bound = 1.0 / jnp.sqrt(fan_in)
        w = jax.random.uniform(k1, (fan_in, fan_out), jnp.float32, -bound, bound)
        b = jax.random.uniform(k2, (fan_out,), jnp.float32, -bound, bound)
        return w, b

    keys = jax.random.split(key, 4)
    dims = [(in_dim, in_dim), (in_dim, mid_dim), (mid_dim, out_dim), (out_dim, out_dim)]
    params = {}
    for i, (k, (fi, fo)) in enumerate(zip(keys, dims), start=1):
        params[f"w{i}"], params[f"b{i}"] = linear(k, fi, fo)
    return params


def pack_params(params, n_windows):
    """Pack all weights + biases into one pre-padded bf16 slab [4, 128, 128].

    Block i holds W_{i+1} ([fan_in, fan_out]) in its top-left corner and bias_{i+1}
    in row 127.  Layers 2-4 consume the row-127 bias via the augmented-activation
    trick; the layer-1 bias is extracted by the wrapper as a separate f32 vector.
    """
    in_dim = n_windows * n_windows * 2
    mid_dim = n_windows * n_windows
    out_dim = n_windows + 1
    dims = [(in_dim, in_dim), (in_dim, mid_dim), (mid_dim, out_dim), (out_dim, out_dim)]
    if max(in_dim, mid_dim, out_dim) > LANES - 1:
        # TODO(synk): feature dims > 127 would need K/N tiling inside the kernel.
        raise ValueError("PredictionMLP dims must fit in 127 lanes for this kernel")

    slab = jnp.zeros((4, LANES, LANES), jnp.float32)
    for i, (fi, fo) in enumerate(dims):
        slab = slab.at[i, :fi, :fo].set(params[f"w{i + 1}"])
        slab = slab.at[i, _BIAS_LANE, :fo].set(params[f"b{i + 1}"])
    return slab.astype(jnp.bfloat16)


def _reference_f32(x, p):
    """Pure-f32 reference matching the PyTorch module exactly."""
    h = jax.nn.relu(x @ p["w1"] + p["b1"])
    h = jax.nn.relu(h @ p["w2"] + p["b2"])
    h = jax.nn.relu(h @ p["w3"] + p["b3"])
    y = h @ p["w4"] + p["b4"]
    return jax.nn.softmax(y[:, 1:], axis=1), jax.nn.sigmoid(y[:, 0])


def _reference_bf16(x, p):
    """Emulates the kernel's matmul numerics: bf16 operands, f32 accumulation."""
    rnd = lambda a: a.astype(jnp.bfloat16).astype(jnp.float32)
    h = x.astype(jnp.float32)
    for i in range(1, 5):
        h = jnp.dot(rnd(h), rnd(p[f"w{i}"]),
                    preferred_element_type=jnp.float32) + rnd(p[f"b{i}"])
        if i < 4:
            h = jax.nn.relu(h)
    return jax.nn.softmax(h[:, 1:], axis=1), jax.nn.sigmoid(h[:, 0])


if __name__ == "__main__":
    n_windows = 4             # in_dim = 32, mid = 16, out_dim = 5
    batch = 8

    key = jax.random.PRNGKey(0)
    kx, kp = jax.random.split(key)
    x = jax.random.normal(kx, (batch, n_windows * n_windows * 2), jnp.float32)
    params = init_params(kp, n_windows)
    slab = pack_params(params, n_windows)

    fwd = jax.jit(functools.partial(prediction_mlp, n_windows=n_windows))
    pred, vis = fwd(x, slab)
    jax.block_until_ready((pred, vis))

    assert pred.shape == (batch, n_windows)
    assert vis.shape == (batch,)

    pred_e, vis_e = _reference_bf16(x, params)   # same matmul numerics as the kernel
    pred_f, vis_f = _reference_f32(x, params)    # original f32 semantics

    # Kernel output is stored bf16 and softmax uses an approx reciprocal, so
    # tolerances account for ~4e-3 bf16 quantization + ~1e-3 relative error.
    assert jnp.allclose(vis, vis_e, atol=1e-2)
    assert jnp.allclose(pred, pred_e, atol=1e-2)
    assert jnp.allclose(vis, vis_f, atol=5e-2)
    assert jnp.allclose(pred, pred_f, atol=5e-2)
    assert jnp.allclose(jnp.sum(pred, axis=1), 1.0, atol=2e-2)

    print("KERNEL_OK")
</pallas_src>

<mosaic_0001>
module attributes {stable_mosaic.version = 11 : i64} {
  func.func @_mlp_kernel(%arg0: i32, %arg1: memref<8x32xbf16, #tpu.memory_space<vmem>>, %arg2: memref<1x128xf32, #tpu.memory_space<vmem>>, %arg3: memref<4x128x128xbf16, #tpu.memory_space<vmem>>, %arg4: memref<8x128xbf16, #tpu.memory_space<vmem>>) attributes {dimension_semantics = [#tpu.dimension_semantics<parallel>], iteration_bounds = array<i64: 1>, scalar_prefetch = 0 : i64, scratch_operands = 0 : i64, tpu.core_type = #tpu.core_type<tc>, window_params = [{transform_indices = @transform_0, window_bounds = array<i64: 8, 32>}, {pipeline_mode = #tpu.pipeline_mode<synchronous>, transform_indices = @transform_1, window_bounds = array<i64: 1, 128>}, {pipeline_mode = #tpu.pipeline_mode<synchronous>, transform_indices = @transform_2, window_bounds = array<i64: 4, 128, 128>}, {transform_indices = @transform_3, window_bounds = array<i64: 8, 128>}]} {
    %0 = tpu.iota {dimensions = array<i32: 1>} : vector<8x128xi32>
    %c127_i32 = arith.constant 127 : i32
    %1 = vector.broadcast %c127_i32 : i32 to vector<8x128xi32>
    %2 = arith.cmpi eq, %0, %1 : vector<8x128xi32>
    %c0 = arith.constant 0 : index
    %c0_0 = arith.constant 0 : index
    %c0_1 = arith.constant 0 : index
    %3 = vector.load %arg3[%c0, %c0_0, %c0_1] : memref<4x128x128xbf16, #tpu.memory_space<vmem>>, vector<1x128x128xbf16>
    %4 = vector.shape_cast %3 : vector<1x128x128xbf16> to vector<128x128xbf16>
    %5 = vector.extract_strided_slice %4 {offsets = [0, 0], sizes = [32, 128], strides = [1, 1]} : vector<128x128xbf16> to vector<32x128xbf16>
    %c0_2 = arith.constant 0 : index
    %c0_3 = arith.constant 0 : index
    %6 = vector.load %arg1[%c0_2, %c0_3] : memref<8x32xbf16, #tpu.memory_space<vmem>>, vector<8x32xbf16>
    %cst = arith.constant dense<0.000000e+00> : vector<8x128xf32>
    %7 = tpu.matmul %6, %5, %cst {dimension_numbers = #tpu.dot_dimension_numbers<[1], [0], [0], [1], [0, 0, 1, 1], [], []>} : vector<8x32xbf16>, vector<32x128xbf16>, vector<8x128xf32> -> vector<8x128xf32>
    %c0_4 = arith.constant 0 : index
    %c0_5 = arith.constant 0 : index
    %8 = vector.load %arg2[%c0_4, %c0_5] : memref<1x128xf32, #tpu.memory_space<vmem>>, vector<1x128xf32>
    %9 = vector.broadcast %8 : vector<1x128xf32> to vector<8x128xf32>
    %10 = arith.addf %7, %9 : vector<8x128xf32>
    %cst_6 = arith.constant 0.000000e+00 : f32
    %11 = vector.broadcast %cst_6 : f32 to vector<8x128xf32>
    %12 = arith.maximumf %10, %11 : vector<8x128xf32>
    %cst_7 = arith.constant 1.000000e+00 : f32
    %13 = vector.broadcast %cst_7 : f32 to vector<8x128xf32>
    %14 = arith.select %2, %13, %12 : vector<8x128xi1>, vector<8x128xf32>
    %15 = arith.truncf %14 : vector<8x128xf32> to vector<8x128xbf16>
    %c1 = arith.constant 1 : index
    %c0_8 = arith.constant 0 : index
    %c0_9 = arith.constant 0 : index
    %16 = vector.load %arg3[%c1, %c0_8, %c0_9] : memref<4x128x128xbf16, #tpu.memory_space<vmem>>, vector<1x128x128xbf16>
    %17 = vector.shape_cast %16 : vector<1x128x128xbf16> to vector<128x128xbf16>
    %cst_10 = arith.constant dense<0.000000e+00> : vector<8x128xf32>
    %18 = tpu.matmul %15, %17, %cst_10 {dimension_numbers = #tpu.dot_dimension_numbers<[1], [0], [0], [1], [0, 0, 1, 1], [], []>} : vector<8x128xbf16>, vector<128x128xbf16>, vector<8x128xf32> -> vector<8x128xf32>
    %cst_11 = arith.constant 0.000000e+00 : f32
    %19 = vector.broadcast %cst_11 : f32 to vector<8x128xf32>
    %20 = arith.maximumf %18, %19 : vector<8x128xf32>
    %cst_12 = arith.constant 1.000000e+00 : f32
    %21 = vector.broadcast %cst_12 : f32 to vector<8x128xf32>
    %22 = arith.select %2, %21, %20 : vector<8x128xi1>, vector<8x128xf32>
    %23 = arith.truncf %22 : vector<8x128xf32> to vector<8x128xbf16>
    %c2 = arith.constant 2 : index
    %c0_13 = arith.constant 0 : index
    %c0_14 = arith.constant 0 : index
    %24 = vector.load %arg3[%c2, %c0_13, %c0_14] : memref<4x128x128xbf16, #tpu.memory_space<vmem>>, vector<1x128x128xbf16>
    %25 = vector.shape_cast %24 : vector<1x128x128xbf16> to vector<128x128xbf16>
    %cst_15 = arith.constant dense<0.000000e+00> : vector<8x128xf32>
    %26 = tpu.matmul %23, %25, %cst_15 {dimension_numbers = #tpu.dot_dimension_numbers<[1], [0], [0], [1], [0, 0, 1, 1], [], []>} : vector<8x128xbf16>, vector<128x128xbf16>, vector<8x128xf32> -> vector<8x128xf32>
    %cst_16 = arith.constant 0.000000e+00 : f32
    %27 = vector.broadcast %cst_16 : f32 to vector<8x128xf32>
    %28 = arith.maximumf %26, %27 : vector<8x128xf32>
    %cst_17 = arith.constant 1.000000e+00 : f32
    %29 = vector.broadcast %cst_17 : f32 to vector<8x128xf32>
    %30 = arith.select %2, %29, %28 : vector<8x128xi1>, vector<8x128xf32>
    %31 = arith.truncf %30 : vector<8x128xf32> to vector<8x128xbf16>
    %c3 = arith.constant 3 : index
    %c0_18 = arith.constant 0 : index
    %c0_19 = arith.constant 0 : index
    %32 = vector.load %arg3[%c3, %c0_18, %c0_19] : memref<4x128x128xbf16, #tpu.memory_space<vmem>>, vector<1x128x128xbf16>
    %33 = vector.shape_cast %32 : vector<1x128x128xbf16> to vector<128x128xbf16>
    %cst_20 = arith.constant dense<0.000000e+00> : vector<8x128xf32>
    %34 = tpu.matmul %31, %33, %cst_20 {dimension_numbers = #tpu.dot_dimension_numbers<[1], [0], [0], [1], [0, 0, 1, 1], [], []>} : vector<8x128xbf16>, vector<128x128xbf16>, vector<8x128xf32> -> vector<8x128xf32>
    %cst_21 = arith.constant 5.000000e-01 : f32
    %35 = vector.broadcast %cst_21 : f32 to vector<8x128xf32>
    %36 = arith.mulf %35, %34 : vector<8x128xf32>
    %37 = math.tanh %36 : vector<8x128xf32>
    %cst_22 = arith.constant 5.000000e-01 : f32
    %38 = vector.broadcast %cst_22 : f32 to vector<8x128xf32>
    %39 = arith.mulf %38, %37 : vector<8x128xf32>
    %cst_23 = arith.constant 5.000000e-01 : f32
    %40 = vector.broadcast %cst_23 : f32 to vector<8x128xf32>
    %41 = arith.addf %39, %40 : vector<8x128xf32>
    %c1_i32 = arith.constant 1 : i32
    %42 = vector.broadcast %c1_i32 : i32 to vector<8x128xi32>
    %43 = arith.cmpi sge, %0, %42 : vector<8x128xi32>
    %c5_i32 = arith.constant 5 : i32
    %44 = vector.broadcast %c5_i32 : i32 to vector<8x128xi32>
    %45 = arith.cmpi slt, %0, %44 : vector<8x128xi32>
    %46 = arith.andi %43, %45 : vector<8x128xi1>
    %cst_24 = arith.constant -1.000000e+30 : f32
    %47 = vector.broadcast %cst_24 : f32 to vector<8x128xf32>
    %48 = arith.select %46, %34, %47 : vector<8x128xi1>, vector<8x128xf32>
    %cst_25 = arith.constant dense<0xFF800000> : vector<8xf32>
    %49 = vector.multi_reduction <maximumf>, %48, %cst_25 [1] : vector<8x128xf32> to vector<8xf32>
    %50 = vector.shape_cast %49 : vector<8xf32> to vector<8x1xf32>
    %51 = vector.broadcast %50 : vector<8x1xf32> to vector<8x128xf32>
    %52 = arith.subf %48, %51 : vector<8x128xf32>
    %53 = math.exp %52 : vector<8x128xf32>
    %cst_26 = arith.constant dense<0.000000e+00> : vector<8xf32>
    %54 = vector.multi_reduction <add>, %53, %cst_26 [1] : vector<8x128xf32> to vector<8xf32>
    %55 = vector.shape_cast %54 : vector<8xf32> to vector<8x1xf32>
    %56 = tpu.reciprocal %55 {approx = true} : vector<8x1xf32> -> vector<8x1xf32>
    %57 = vector.broadcast %56 : vector<8x1xf32> to vector<8x128xf32>
    %58 = arith.mulf %53, %57 : vector<8x128xf32>
    %c0_i32 = arith.constant 0 : i32
    %59 = vector.broadcast %c0_i32 : i32 to vector<8x128xi32>
    %60 = arith.cmpi eq, %0, %59 : vector<8x128xi32>
    %61 = arith.select %60, %41, %58 : vector<8x128xi1>, vector<8x128xf32>
    %62 = arith.truncf %61 : vector<8x128xf32> to vector<8x128xbf16>
    %c0_27 = arith.constant 0 : index
    %c0_28 = arith.constant 0 : index
    %63 = vector.load %arg4[%c0_27, %c0_28] : memref<8x128xbf16, #tpu.memory_space<vmem>>, vector<8x128xbf16>
    tpu.vector_store %arg4[%c0_27, %c0_28], %62 {strides = array<i32>} : memref<8x128xbf16, #tpu.memory_space<vmem>>, vector<8x128xbf16>,
    return
  }
  func.func @transform_0(%arg0: i32) -> (i32, i32) {
    %c0_i32 = arith.constant 0 : i32
    %c0_i32_0 = arith.constant 0 : i32
    return %arg0, %c0_i32 : i32, i32
  }
  func.func @transform_1(%arg0: i32) -> (i32, i32) {
    %c0_i32 = arith.constant 0 : i32
    %c0_i32_0 = arith.constant 0 : i32
    %c0_i32_1 = arith.constant 0 : i32
    return %c0_i32, %c0_i32_0 : i32, i32
  }
  func.func @transform_2(%arg0: i32) -> (i32, i32, i32) {
    %c0_i32 = arith.constant 0 : i32
    %c0_i32_0 = arith.constant 0 : i32
    %c0_i32_1 = arith.constant 0 : i32
    %c0_i32_2 = arith.constant 0 : i32
    return %c0_i32, %c0_i32_0, %c0_i32_1 : i32, i32, i32
  }
  func.func @transform_3(%arg0: i32) -> (i32, i32) {
    %c0_i32 = arith.constant 0 : i32
    %c0_i32_0 = arith.constant 0 : i32
    return %arg0, %c0_i32 : i32, i32
  }
}

</mosaic_0001>

<bundles_post_ra>
// kernel: prediction_mlp.1
= control target key start
LH: loop header
LB: loop body
LE: loop exit
PB: predicated region body
PF: predicated region fallthrough
CT: control target
= control target key end

     0   :  { %8 = vsyncpa [#allocation3], 0  ;;  %s635_s12 = smov [#allocation2]   ;;  %s718_s0 = inlined_call_operand.vmem [shape: bf16[8,32], index: 0, kind: input, shape index: {}]   ;;  %s719_s1 = inlined_call_operand.vmem [shape: f32[1,128], index: 1, kind: input, shape index: {}]   ;;  %s720_s2 = inlined_call_operand.hbm [shape: bf16[4,128,128], index: 2, kind: input, shape index: {}]   ;;  %s721_s3 = inlined_call_operand.vmem [shape: bf16[8,128], index: 3, kind: output, shape index: {}]  }
   0x1   :  { %s18_s13 = sshll.u32 %s635_s12, 4  ;;  %s19_s13 = int_to_ptr.vmem [resolvable:$true] %s18_s13 }
   0x2   :  { %s621_s14 = scalar_lea.vmem %s19_s13, 4096  ;;  %p626_p1 = scmp.lt.s32.totalorder %s19_s13, %s19_s13 }
   0x3   :  { %p622_p0 = scmp.ne.s32.totalorder %s19_s13, %s621_s14  ;;  %p627_p2 = scmp.lt.s32.totalorder %s621_s14, %s621_s14 }
   0x5   :  { %p628_p3 = por %p627_p2, %p626_p1 }
   0x7   :  { %p629_p4 = pnand %p628_p3, %p622_p0 }
   0x9   :  { %632 = shalt.err (!%p629_p4)
}
   0xa   :  { %s636_s15 = smov 64   ;;  %s637_s16 = smov 4  }
   0xb   :  { %24 = dma.hbm_to_vmem [thread:$0]  %s720_s2, 4096, %s19_s13, [#allocation3], %s636_s15, %s636_s15, %s637_s16  }
   0xc   :  { %633 = dma.done.wait [#allocation3], 4096  }
   0xd   :  { %634 = vsyncadd [#allocation3], 4294963200  ;;  %v638_v0 = vmov 0.0   ;;  %vm639_vm0 = vmmov 0   ;;  %v581_v1 = vld [vmem:[#allocation2 + $0x8] sm:$0xff]   ;;  %v582_v2 = vld [vmem:[#allocation2] sm:$0xff]   ;;  %v29_v19 = vlaneseq }
   0xe   :  { %508 = vmatprep.subr.bf16.mxu0 %v638_v0  ;;  %512 = vmatprep.mubr.msk.bf16.mxu0 %vm639_vm0, %v638_v0  ;;  %v583_v3 = vld [vmem:[#allocation2 + $0x78] sm:$0xff]   ;;  %vm56_vm1 = vcmask 261120   ;;  %v584_v4 = vld [vmem:[#allocation2 + $0x70] sm:$0xff]   ;;  %v36_v5 = vld [vmem:[%s718_s0] sm:$0xf] }
   0xf   :  { %516 = vmatprep.subr.bf16.mxu1 %v638_v0  ;;  %532 = vmatprep.mubr.msk.bf16.mxu1 %vm639_vm0, %v638_v0  ;;  %v585_v6 = vld [vmem:[#allocation2 + $0x68] sm:$0xff]   ;;  %v586_v7 = vld [vmem:[#allocation2 + $0x60] sm:$0xff]   ;;  %v587_v8 = vld [vmem:[#allocation2 + $0x58] sm:$0xff]   ;;  %v691_v20 = vand.u32 127, %v29_v19 }
  0x10   :  { %509 = vmatpush3.bf16.msra.mxu0 %v581_v1  ;;  %517 = vmatpush3.bf16.msra.mxu1 %v583_v3  ;;  %v588_v9 = vld [vmem:[#allocation2 + $0x50] sm:$0xff]   ;;  %v589_v10 = vld [vmem:[#allocation2 + $0x48] sm:$0xff]   ;;  %v590_v11 = vld [vmem:[#allocation2 + $0x40] sm:$0xff]  }
  0x11   :  { %510 = vmatprep.subr.bf16.mxu0 %v638_v0  ;;  %518 = vmatprep.subr.bf16.mxu1 %v638_v0  ;;  %v591_v12 = vld [vmem:[#allocation2 + $0xb8] sm:$0xff]   ;;  %v592_v13 = vld [vmem:[#allocation2 + $0xb0] sm:$0xff]   ;;  %v593_v14 = vld [vmem:[#allocation2 + $0xa8] sm:$0xff]   ;;  %vm31_vm2 = vcmp.eq.s32.totalorder %v691_v20, 127  ;;  %vm428_vm3 = vcmp.ge.s32.totalorder %v691_v20, 1  ;;  %vm429_vm4 = vcmp.lt.s32.totalorder %v691_v20, 5 }
  0x12   :  { %v594_v15 = vld [vmem:[#allocation2 + $0xa0] sm:$0xff]   ;;  %v595_v16 = vld [vmem:[#allocation2 + $0x98] sm:$0xff]   ;;  %v596_v17 = vld [vmem:[#allocation2 + $0x90] sm:$0xff]   ;;  %vm441_vm6 = vcmp.eq.s32.totalorder %v691_v20, 0 }
  0x13   :  { %v597_v18 = vld [vmem:[#allocation2 + $0x88] sm:$0xff]   ;;  %v450_v21 = vld [vmem:[%s719_s1] ss:$0 sm:$0xff]  ;;  %v599_v31 = vld [vmem:[#allocation2 + $0xf8] sm:$0xff]  }
  0x14   :  { %511 = vmatpush3.bf16.msra.mxu0 %v582_v2  ;;  %519 = vmatpush3.bf16.msra.mxu1 %v584_v4  ;;  %v598_v30 = vld [vmem:[#allocation2 + $0x80] sm:$0xff]   ;;  %v600_v32 = vld [vmem:[#allocation2 + $0xf0] sm:$0xff]   ;;  %v601_v33 = vld [vmem:[#allocation2 + $0xe8] sm:$0xff]  }
  0x15   :  { %536 = vmatprep.subr.bf16.mxu0 %v638_v0  ;;  %520 = vmatprep.subr.bf16.mxu1 %v638_v0  ;;  %v602_v34 = vld [vmem:[#allocation2 + $0xe0] sm:$0xff]   ;;  %v603_v35 = vld [vmem:[#allocation2 + $0xd8] sm:$0xff]   ;;  %v604_v36 = vld [vmem:[#allocation2 + $0xd0] sm:$0xff]  }
  0x16   :  { %v605_v37 = vld [vmem:[#allocation2 + $0xc8] sm:$0xff]   ;;  %v606_v45 = vld [vmem:[#allocation2 + $0xc0] sm:$0xff]   ;;  %vm430_vm5 = vmand %vm428_vm3, %vm429_vm4 }
  0x17   :  { %513 = vmatmul.mubr.msk.bf16.vlgmr.msra.gmra.mxu0 %vm56_vm1, %v36_v5 }
  0x18   :  { %552 = vmatprep.mubr.msk.bf16.mxu0 %vm639_vm0, %v638_v0  ;;  %521 = vmatpush3.bf16.msra.mxu1 %v585_v6 }
  0x19   :  { %522 = vmatprep.subr.bf16.mxu1 %v638_v0  ;;  %537 = vmatpush3.bf16.msra.mxu0 %v591_v12 }
  0x1a   :  { %538 = vmatprep.subr.bf16.mxu0 %v638_v0 }
  0x1c   :  { %523 = vmatpush3.bf16.msra.mxu1 %v586_v7 }
  0x1d   :  { %524 = vmatprep.subr.bf16.mxu1 %v638_v0  ;;  %539 = vmatpush3.bf16.msra.mxu0 %v592_v13 }
  0x1e   :  { %540 = vmatprep.subr.bf16.mxu0 %v638_v0 }
  0x20   :  { %525 = vmatpush3.bf16.msra.mxu1 %v587_v8 }
  0x21   :  { %526 = vmatprep.subr.bf16.mxu1 %v638_v0  ;;  %541 = vmatpush3.bf16.msra.mxu0 %v593_v14 }
  0x22   :  { %542 = vmatprep.subr.bf16.mxu0 %v638_v0 }
  0x24   :  { %527 = vmatpush3.bf16.msra.mxu1 %v588_v9 }
  0x25   :  { %528 = vmatprep.subr.bf16.mxu1 %v638_v0  ;;  %543 = vmatpush3.bf16.msra.mxu0 %v594_v15 }
  0x26   :  { %544 = vmatprep.subr.bf16.mxu0 %v638_v0 }
  0x28   :  { %529 = vmatpush3.bf16.msra.mxu1 %v589_v10 }
  0x29   :  { %530 = vmatprep.subr.bf16.mxu1 %v638_v0  ;;  %545 = vmatpush3.bf16.msra.mxu0 %v595_v16 }
  0x2a   :  { %546 = vmatprep.subr.bf16.mxu0 %v638_v0 }
  0x2c   :  { %531 = vmatpush3.bf16.msra.mxu1 %v590_v11 }
  0x2d   :  { %556 = vmatprep.subr.bf16.mxu1 %v638_v0  ;;  %547 = vmatpush3.bf16.msra.mxu0 %v596_v17 }
  0x2e   :  { %548 = vmatprep.subr.bf16.mxu0 %v638_v0 }
  0x31   :  { %549 = vmatpush3.bf16.msra.mxu0 %v597_v18 }
  0x32   :  { %550 = vmatprep.subr.bf16.mxu0 %v638_v0 }
  0x35   :  { %551 = vmatpush3.bf16.msra.mxu0 %v598_v30 }
  0xd7   :  { %v94_v22 = vpop.f32.mrf.mxu0 }
  0xd8   :  { %v95_v23 = vadd.f32 %v450_v21, %v94_v22 }
  0xd9   :  { %v514_v24 = vpop.f32.mrf.mxu0 }
  0xda   :  { %v100_v25 = vmax.f32 %v95_v23, 0.0 }
  0xdb   :  { %v97_v26 = vpop.f32.mrf.mxu0 }
  0xdc   :  { %v101_v27 = vsel %vm31_vm2, 1.0, %v100_v25 }
  0xdd   :  { %v102_v28 = vpack.c.bf16 %v101_v27, %v101_v27  ;;  %v515_v29 = vpop.f32.mrf.mxu0 }
  0xdf   :  { %533 = vmatmul.mubr.bf16.vlgmr.msra.gmra.mxu1 %v102_v28 }
  0xe0   :  { %572 = vmatprep.mubr.msk.bf16.mxu1 %vm639_vm0, %v638_v0  ;;  %557 = vmatpush3.bf16.msra.mxu1 %v599_v31 }
  0xe1   :  { %558 = vmatprep.subr.bf16.mxu1 %v638_v0 }
  0xe4   :  { %559 = vmatpush3.bf16.msra.mxu1 %v600_v32 }
  0xe5   :  { %560 = vmatprep.subr.bf16.mxu1 %v638_v0 }
  0xe8   :  { %561 = vmatpush3.bf16.msra.mxu1 %v601_v33 }
  0xe9   :  { %562 = vmatprep.subr.bf16.mxu1 %v638_v0 }
  0xec   :  { %563 = vmatpush3.bf16.msra.mxu1 %v602_v34 }
  0xed   :  { %564 = vmatprep.subr.bf16.mxu1 %v638_v0 }
  0xf0   :  { %565 = vmatpush3.bf16.msra.mxu1 %v603_v35 }
  0xf1   :  { %566 = vmatprep.subr.bf16.mxu1 %v638_v0 }
  0xf4   :  { %567 = vmatpush3.bf16.msra.mxu1 %v604_v36 }
  0xf5   :  { %568 = vmatprep.subr.bf16.mxu1 %v638_v0 }
  0xf8   :  { %569 = vmatpush3.bf16.msra.mxu1 %v605_v37 }
  0xf9   :  { %570 = vmatprep.subr.bf16.mxu1 %v638_v0 }
  0xfc   :  { %571 = vmatpush3.bf16.msra.mxu1 %v606_v45 }
 0x19f   :  { %v202_v38 = vpop.f32.mrf.mxu1 }
 0x1a0   :  { %v208_v39 = vmax.f32 %v202_v38, 0.0 }
 0x1a1   :  { %v534_v40 = vpop.f32.mrf.mxu1 }
 0x1a2   :  { %v209_v41 = vsel %vm31_vm2, 1.0, %v208_v39 }
 0x1a3   :  { %v210_v42 = vpack.c.bf16 %v209_v41, %v209_v41  ;;  %v205_v43 = vpop.f32.mrf.mxu1 }
 0x1a5   :  { %v535_v44 = vpop.f32.mrf.mxu1  ;;  %553 = vmatmul.mubr.bf16.vlgmr.msra.gmra.mxu0 %v210_v42 }
 0x265   :  { %v310_v46 = vpop.f32.mrf.mxu0 }
 0x266   :  { %v316_v47 = vmax.f32 %v310_v46, 0.0 }
 0x267   :  { %v554_v48 = vpop.f32.mrf.mxu0 }
 0x268   :  { %v317_v49 = vsel %vm31_vm2, 1.0, %v316_v47 }
 0x269   :  { %v318_v50 = vpack.c.bf16 %v317_v49, %v317_v49  ;;  %v313_v51 = vpop.f32.mrf.mxu0 }
 0x26b   :  { %v555_v52 = vpop.f32.mrf.mxu0  ;;  %573 = vmatmul.mubr.bf16.vlgmr.msra.gmra.mxu1 %v318_v50 }
 0x32b   :  { %v418_v53 = vpop.f32.mrf.mxu1 }
 0x32c   :  { %v431_v54 = vsel %vm430_vm5, %v418_v53, -1e+30  ;;  %v424_v62 = vmul.f32 0.5, %v418_v53 }
 0x32d   :  { %432 = vmax.xlane.f32.xlu0 %v431_v54  ;;  %v574_v55 = vpop.f32.mrf.mxu1 }
 0x32f   :  { %v421_v56 = vpop.f32.mrf.mxu1 }
 0x331   :  { %v575_v57 = vpop.f32.mrf.mxu1 }
 0x3b6   :  { %v433_v58 = vpop.xlane.xlu0 %432 }
 0x3b7   :  { %v434_v59 = vsub.f32 %v431_v54, %v433_v58 }
 0x3b9   :  { %v435_v60 = vmul.f32 1.442695, %v434_v59 }
 0x3bb   :  { %607 = vpow2.f32 %v435_v60 }
 0x3bc   :  { %609 = vtanh.f32 %v424_v62 }
 0x3c8   :  { %v608_v61 = vpop.eup %607 }
 0x3c9   :  { %437 = vadd.xlane.f32.xlu0 %v608_v61  ;;  %v610_v0 = vpop.eup %609 }
 0x3ca   :  { %v426_v1 = vmul.f32 0.5, %v610_v0 }
 0x3cc   :  { %v427_v3 = vadd.f32 0.5, %v426_v1 }
 0x452   :  { %v438_v63 = vpop.xlane.xlu0 %437 }
 0x453   :  { %611 = vrcp.f32 %v438_v63 }
 0x460   :  { %v612_v2 = vpop.eup %611 }
 0x461   :  { %v440_v4 = vmul.f32 %v612_v2, %v608_v61 }
 0x463   :  { %v442_v5 = vsel %vm441_vm6, %v427_v3, %v440_v4 }
 0x464   :  { %v443_v6 = vpack.c.bf16 %v442_v5, %v442_v5 }
 0x466   :  { %444 = vst [vmem:[%s721_s3] sm:$0xf] %v443_v6 }
 0x467   :  { %449 = vsyncpa [#allocation3], 1 }

</bundles_post_ra>
